<compile_context>
chip_gen: v6e
topology: v6e:2x2x1
jax: 0.10.0
libtpu: 0.0.40
codegen_flags: <defaults>
</compile_context>

<pallas_src>
import jax
import jax.numpy as jnp
from jax.experimental import pallas as pl
from jax.experimental.pallas import tpu as pltpu

BN_EPS = 1e-5


def _make_fused_mlp_kernel(num_hidden, has_out):
    """Build a whole-network fused kernel:
    (Linear -> BatchNorm1d(train) -> ReLU) x num_hidden -> [final Linear]."""

    def kernel(*refs):
        out_ref = refs[-1]
        h = refs[0][...]                                  # [B, Din], stays in vregs
        idx = 1
        for _ in range(num_hidden):
            w_ref, gamma_ref, beta_ref = refs[idx], refs[idx + 1], refs[idx + 2]
            idx += 3
            # Linear. Hidden bias is intentionally omitted: BatchNorm subtracts
            # the batch mean right after, which cancels any constant offset.
            y = jnp.dot(h, w_ref[...], preferred_element_type=jnp.float32)  # [B, Dout]
            # BatchNorm1d training mode: per-feature batch mean / biased variance,
            # reusing the centered activation once.
            mean = jnp.mean(y, axis=0, keepdims=True)                       # [1, Dout]
            yc = y - mean
            var = jnp.mean(yc * yc, axis=0, keepdims=True)
            y = yc * jax.lax.rsqrt(var + BN_EPS) * gamma_ref[...] + beta_ref[...]
            h = jnp.maximum(y, 0.0)                                         # ReLU
        if has_out:
            w_ref, b_ref = refs[idx], refs[idx + 1]
            h = jnp.dot(h, w_ref[...], preferred_element_type=jnp.float32) + b_ref[...]
        out_ref[...] = h

    return kernel


def make_fused_mlp_forward(batch, input_dim, embed_dims, output_dim=1):
    """Returns a jitted callable f(x, *packed_params) -> [batch, out_dim]."""
    num_hidden = len(embed_dims)
    has_out = output_dim is not None
    out_dim = output_dim if has_out else (embed_dims[-1] if embed_dims else input_dim)

    # Advisory cost estimate (this kernel is tiny; tell XLA so).
    flops = 0
    transcendentals = 0
    bytes_accessed = (batch * input_dim + batch * out_dim) * 4
    din = input_dim
    for d in embed_dims:
        flops += 2 * batch * din * d + 6 * batch * d      # matmul + BN/ReLU elementwise
        transcendentals += d                              # per-feature rsqrt
        bytes_accessed += (din * d + 2 * d) * 4           # W, gamma, beta
        din = d
    if has_out:
        flops += 2 * batch * din * out_dim + batch * out_dim
        bytes_accessed += (din * out_dim + out_dim) * 4   # W, b

    n_in = 1 + 3 * num_hidden + (2 if has_out else 0)
    vmem = pl.BlockSpec(memory_space=pltpu.MemorySpace.VMEM)
    fused = pl.pallas_call(
        _make_fused_mlp_kernel(num_hidden, has_out),
        out_shape=jax.ShapeDtypeStruct((batch, out_dim), jnp.float32),
        in_specs=[vmem] * n_in,
        out_specs=vmem,
        cost_estimate=pl.CostEstimate(
            flops=flops,
            transcendentals=transcendentals,
            bytes_accessed=bytes_accessed,
        ),
    )
    return jax.jit(lambda x, *ops: fused(x, *ops))


def init_mlp_params(key, input_dim, embed_dims, output_dim=1):
    """Deterministic init mirroring PyTorch defaults:
    Linear: U(-1/sqrt(fan_in), 1/sqrt(fan_in)); BatchNorm: gamma=1, beta=0."""
    params = []
    in_dim = input_dim
    for embed_dim in embed_dims:
        key, kw, kb = jax.random.split(key, 3)
        bound = 1.0 / jnp.sqrt(in_dim)
        w = jax.random.uniform(kw, (embed_dim, in_dim), jnp.float32, -bound, bound)
        b = jax.random.uniform(kb, (embed_dim,), jnp.float32, -bound, bound)
        params.append(dict(kind="hidden", w=w, b=b,
                           gamma=jnp.ones((embed_dim,), jnp.float32),
                           beta=jnp.zeros((embed_dim,), jnp.float32)))
        in_dim = embed_dim
    if output_dim is not None:
        key, kw, kb = jax.random.split(key, 3)
        bound = 1.0 / jnp.sqrt(in_dim)
        w = jax.random.uniform(kw, (output_dim, in_dim), jnp.float32, -bound, bound)
        b = jax.random.uniform(kb, (output_dim,), jnp.float32, -bound, bound)
        params.append(dict(kind="out", w=w, b=b))
    return params


def pack_params(params):
    """One-time layout plumbing: weights pre-transposed to [Din, Dout], BN
    scale/shift and final bias as [1, D]. Hidden Linear biases are dropped on
    purpose (BatchNorm's mean subtraction cancels them exactly)."""
    ops = []
    for layer in params:
        if layer["kind"] == "hidden":
            ops += [jnp.asarray(layer["w"].T),
                    layer["gamma"][None, :],
                    layer["beta"][None, :]]
        else:
            ops += [jnp.asarray(layer["w"].T), layer["b"][None, :]]
    return tuple(ops)


def mlp_reference(params, x):
    """Pure-JAX reference matching torch training-mode forward (biases included,
    to verify the in-kernel bias drop is an exact cancellation)."""
    h = x
    for layer in params:
        y = h @ layer["w"].T + layer["b"][None, :]
        if layer["kind"] == "hidden":
            mean = jnp.mean(y, axis=0, keepdims=True)
            var = jnp.mean((y - mean) ** 2, axis=0, keepdims=True)
            y = (y - mean) / jnp.sqrt(var + BN_EPS)
            y = y * layer["gamma"][None, :] + layer["beta"][None, :]
            y = jnp.maximum(y, 0.0)
        h = y
    return h


if __name__ == "__main__":
    key = jax.random.PRNGKey(0)
    k_x, k_p = jax.random.split(key)

    batch = 8
    input_dim = 32
    embed_dims = (32, 16)
    output_dim = 1

    x = jax.random.normal(k_x, (batch, input_dim), jnp.float32)
    params = init_mlp_params(k_p, input_dim, embed_dims, output_dim)

    # One-time packing + one fused, jitted pallas_call for the whole network.
    packed = pack_params(params)
    forward = make_fused_mlp_forward(batch, input_dim, embed_dims, output_dim)

    out = forward(x, *packed)
    out = jax.block_until_ready(out)

    ref = mlp_reference(params, x)
    assert out.shape == (batch, output_dim), out.shape
    assert jnp.allclose(out, ref, atol=1e-4, rtol=1e-4), (
        f"max abs err {jnp.max(jnp.abs(out - ref))}"
    )
    print("KERNEL_OK")
</pallas_src>

<mosaic_0001>
module attributes {stable_mosaic.version = 11 : i64} {
  func.func @kernel(%arg0: memref<8x32xf32, #tpu.memory_space<vmem>>, %arg1: memref<32x32xf32, #tpu.memory_space<vmem>>, %arg2: memref<1x32xf32, #tpu.memory_space<vmem>>, %arg3: memref<1x32xf32, #tpu.memory_space<vmem>>, %arg4: memref<32x16xf32, #tpu.memory_space<vmem>>, %arg5: memref<1x16xf32, #tpu.memory_space<vmem>>, %arg6: memref<1x16xf32, #tpu.memory_space<vmem>>, %arg7: memref<16x1xf32, #tpu.memory_space<vmem>>, %arg8: memref<1x1xf32, #tpu.memory_space<vmem>>, %arg9: memref<8x1xf32, #tpu.memory_space<vmem>>) attributes {dimension_semantics = [], scalar_prefetch = 0 : i64, scratch_operands = 0 : i64, tpu.core_type = #tpu.core_type<tc>} {
    %c0 = arith.constant 0 : index
    %c0_0 = arith.constant 0 : index
    %0 = vector.load %arg0[%c0, %c0_0] : memref<8x32xf32, #tpu.memory_space<vmem>>, vector<8x32xf32>
    %c0_1 = arith.constant 0 : index
    %c0_2 = arith.constant 0 : index
    %1 = vector.load %arg1[%c0_1, %c0_2] : memref<32x32xf32, #tpu.memory_space<vmem>>, vector<32x32xf32>
    %cst = arith.constant dense<0.000000e+00> : vector<8x32xf32>
    %2 = tpu.matmul %0, %1, %cst {dimension_numbers = #tpu.dot_dimension_numbers<[1], [0], [0], [1], [0, 0, 1, 1], [], []>} : vector<8x32xf32>, vector<32x32xf32>, vector<8x32xf32> -> vector<8x32xf32>
    %cst_3 = arith.constant dense<0.000000e+00> : vector<32xf32>
    %3 = vector.multi_reduction <add>, %2, %cst_3 [0] : vector<8x32xf32> to vector<32xf32>
    %4 = vector.shape_cast %3 : vector<32xf32> to vector<1x32xf32>
    %cst_4 = arith.constant 8.000000e+00 : f32
    %5 = vector.broadcast %cst_4 : f32 to vector<1x32xf32>
    %6 = arith.divf %4, %5 : vector<1x32xf32>
    %7 = vector.broadcast %6 : vector<1x32xf32> to vector<8x32xf32>
    %8 = arith.subf %2, %7 : vector<8x32xf32>
    %9 = arith.mulf %8, %8 : vector<8x32xf32>
    %cst_5 = arith.constant dense<0.000000e+00> : vector<32xf32>
    %10 = vector.multi_reduction <add>, %9, %cst_5 [0] : vector<8x32xf32> to vector<32xf32>
    %11 = vector.shape_cast %10 : vector<32xf32> to vector<1x32xf32>
    %cst_6 = arith.constant 8.000000e+00 : f32
    %12 = vector.broadcast %cst_6 : f32 to vector<1x32xf32>
    %13 = arith.divf %11, %12 : vector<1x32xf32>
    %cst_7 = arith.constant 9.99999974E-6 : f32
    %14 = vector.broadcast %cst_7 : f32 to vector<1x32xf32>
    %15 = arith.addf %13, %14 : vector<1x32xf32>
    %16 = math.rsqrt %15 : vector<1x32xf32>
    %17 = vector.broadcast %16 : vector<1x32xf32> to vector<8x32xf32>
    %18 = arith.mulf %8, %17 : vector<8x32xf32>
    %c0_8 = arith.constant 0 : index
    %c0_9 = arith.constant 0 : index
    %19 = vector.load %arg2[%c0_8, %c0_9] : memref<1x32xf32, #tpu.memory_space<vmem>>, vector<1x32xf32>
    %20 = vector.broadcast %19 : vector<1x32xf32> to vector<8x32xf32>
    %21 = arith.mulf %18, %20 : vector<8x32xf32>
    %c0_10 = arith.constant 0 : index
    %c0_11 = arith.constant 0 : index
    %22 = vector.load %arg3[%c0_10, %c0_11] : memref<1x32xf32, #tpu.memory_space<vmem>>, vector<1x32xf32>
    %23 = vector.broadcast %22 : vector<1x32xf32> to vector<8x32xf32>
    %24 = arith.addf %21, %23 : vector<8x32xf32>
    %cst_12 = arith.constant 0.000000e+00 : f32
    %25 = vector.broadcast %cst_12 : f32 to vector<8x32xf32>
    %26 = arith.maximumf %24, %25 : vector<8x32xf32>
    %c0_13 = arith.constant 0 : index
    %c0_14 = arith.constant 0 : index
    %27 = vector.load %arg4[%c0_13, %c0_14] : memref<32x16xf32, #tpu.memory_space<vmem>>, vector<32x16xf32>
    %cst_15 = arith.constant dense<0.000000e+00> : vector<8x16xf32>
    %28 = tpu.matmul %26, %27, %cst_15 {dimension_numbers = #tpu.dot_dimension_numbers<[1], [0], [0], [1], [0, 0, 1, 1], [], []>} : vector<8x32xf32>, vector<32x16xf32>, vector<8x16xf32> -> vector<8x16xf32>
    %cst_16 = arith.constant dense<0.000000e+00> : vector<16xf32>
    %29 = vector.multi_reduction <add>, %28, %cst_16 [0] : vector<8x16xf32> to vector<16xf32>
    %30 = vector.shape_cast %29 : vector<16xf32> to vector<1x16xf32>
    %cst_17 = arith.constant 8.000000e+00 : f32
    %31 = vector.broadcast %cst_17 : f32 to vector<1x16xf32>
    %32 = arith.divf %30, %31 : vector<1x16xf32>
    %33 = vector.broadcast %32 : vector<1x16xf32> to vector<8x16xf32>
    %34 = arith.subf %28, %33 : vector<8x16xf32>
    %35 = arith.mulf %34, %34 : vector<8x16xf32>
    %cst_18 = arith.constant dense<0.000000e+00> : vector<16xf32>
    %36 = vector.multi_reduction <add>, %35, %cst_18 [0] : vector<8x16xf32> to vector<16xf32>
    %37 = vector.shape_cast %36 : vector<16xf32> to vector<1x16xf32>
    %cst_19 = arith.constant 8.000000e+00 : f32
    %38 = vector.broadcast %cst_19 : f32 to vector<1x16xf32>
    %39 = arith.divf %37, %38 : vector<1x16xf32>
    %cst_20 = arith.constant 9.99999974E-6 : f32
    %40 = vector.broadcast %cst_20 : f32 to vector<1x16xf32>
    %41 = arith.addf %39, %40 : vector<1x16xf32>
    %42 = math.rsqrt %41 : vector<1x16xf32>
    %43 = vector.broadcast %42 : vector<1x16xf32> to vector<8x16xf32>
    %44 = arith.mulf %34, %43 : vector<8x16xf32>
    %c0_21 = arith.constant 0 : index
    %c0_22 = arith.constant 0 : index
    %45 = vector.load %arg5[%c0_21, %c0_22] : memref<1x16xf32, #tpu.memory_space<vmem>>, vector<1x16xf32>
    %46 = vector.broadcast %45 : vector<1x16xf32> to vector<8x16xf32>
    %47 = arith.mulf %44, %46 : vector<8x16xf32>
    %c0_23 = arith.constant 0 : index
    %c0_24 = arith.constant 0 : index
    %48 = vector.load %arg6[%c0_23, %c0_24] : memref<1x16xf32, #tpu.memory_space<vmem>>, vector<1x16xf32>
    %49 = vector.broadcast %48 : vector<1x16xf32> to vector<8x16xf32>
    %50 = arith.addf %47, %49 : vector<8x16xf32>
    %cst_25 = arith.constant 0.000000e+00 : f32
    %51 = vector.broadcast %cst_25 : f32 to vector<8x16xf32>
    %52 = arith.maximumf %50, %51 : vector<8x16xf32>
    %c0_26 = arith.constant 0 : index
    %c0_27 = arith.constant 0 : index
    %53 = vector.load %arg7[%c0_26, %c0_27] : memref<16x1xf32, #tpu.memory_space<vmem>>, vector<16x1xf32>
    %cst_28 = arith.constant dense<0.000000e+00> : vector<8x1xf32>
    %54 = tpu.matmul %52, %53, %cst_28 {dimension_numbers = #tpu.dot_dimension_numbers<[1], [0], [0], [1], [0, 0, 1, 1], [], []>} : vector<8x16xf32>, vector<16x1xf32>, vector<8x1xf32> -> vector<8x1xf32>
    %c0_29 = arith.constant 0 : index
    %c0_30 = arith.constant 0 : index
    %55 = vector.load %arg8[%c0_29, %c0_30] : memref<1x1xf32, #tpu.memory_space<vmem>>, vector<1x1xf32>
    %56 = vector.broadcast %55 : vector<1x1xf32> to vector<8x1xf32>
    %57 = arith.addf %54, %56 : vector<8x1xf32>
    %c0_31 = arith.constant 0 : index
    %c0_32 = arith.constant 0 : index
    %58 = vector.load %arg9[%c0_31, %c0_32] : memref<8x1xf32, #tpu.memory_space<vmem>>, vector<8x1xf32>
    tpu.vector_store %arg9[%c0_31, %c0_32], %57 {strides = array<i32>} : memref<8x1xf32, #tpu.memory_space<vmem>>, vector<8x1xf32>,
    return
  }
}

</mosaic_0001>

<bundles_post_ra>
// kernel: _lambda_.1
= control target key start
LH: loop header
LB: loop body
LE: loop exit
PB: predicated region body
PF: predicated region fallthrough
CT: control target
= control target key end

     0   :  { %v412_v0 = vmov 0.0   ;;  %vm413_vm0 = vmmov 0   ;;  %vm39_vm1 = vcmask 261120   ;;  %vm229_vm2 = vcmask 130048   ;;  %s538_s1 = inlined_call_operand.vmem [shape: f32[32,32], index: 1, kind: input, shape index: {}]   ;;  %s539_s0 = inlined_call_operand.vmem [shape: f32[8,32], index: 0, kind: input, shape index: {}]   ;;  %s540_s4 = inlined_call_operand.vmem [shape: f32[32,16], index: 4, kind: input, shape index: {}]   ;;  %s541_s2 = inlined_call_operand.vmem [shape: f32[1,32], index: 2, kind: input, shape index: {}]   ;;  %s542_s3 = inlined_call_operand.vmem [shape: f32[1,32], index: 3, kind: input, shape index: {}]   ;;  %s543_s7 = inlined_call_operand.vmem [shape: f32[16,1], index: 7, kind: input, shape index: {}]   ;;  %s544_s8 = inlined_call_operand.<no memory space> [shape: f32[1,1], index: 8, kind: input, shape index: {}]   ;;  %s545_s5 = inlined_call_operand.vmem [shape: f32[1,16], index: 5, kind: input, shape index: {}]   ;;  %s546_s6 = inlined_call_operand.vmem [shape: f32[1,16], index: 6, kind: input, shape index: {}]   ;;  %s547_s9 = inlined_call_operand.vmem [shape: f32[8,1], index: 9, kind: output, shape index: {}]  }
   0x1   :  { %377 = vmatprep.subr.mxu0 %v412_v0  ;;  %v38_v1 = vld [vmem:[%s538_s1 + $0x18] sm:$0xff]  ;;  %v37_v2 = vld [vmem:[%s538_s1 + $0x10] sm:$0xff]  ;;  %385 = vmatprep.mubr.msk.f32.mxu0 %vm413_vm0, %v412_v0  ;;  %v36_v3 = vld [vmem:[%s538_s1 + $0x8] sm:$0xff]  ;;  %v14_v40 = vstv %s544_s8  ;;  %vm350_vm3 = vcmask 7168  }
   0x2   :  { %378 = vmatpush3.msra.mxu0 %v38_v1  ;;  %388 = vmatprep.subr.mxu1 %v412_v0  ;;  %v35_v4 = vld [vmem:[%s538_s1] sm:$0xff]  ;;  %v155_v6 = vld [vmem:[%s540_s4 + $0x18] sm:$0xff]  ;;  %v154_v7 = vld [vmem:[%s540_s4 + $0x10] sm:$0xff]  ;;  %15 = vst [vmem:[#allocation2] sm:$0x1] %v14_v40 }
   0x3   :  { %379 = vmatprep.subr.mxu0 %v412_v0  ;;  %396 = vmatprep.mubr.msk.f32.mxu1 %vm413_vm0, %v412_v0  ;;  %v34_v5 = vld [vmem:[%s539_s0] sm:$0xff]  ;;  %v153_v8 = vld [vmem:[%s540_s4 + $0x8] sm:$0xff] }
   0x4   :  { %380 = vmatpush3.msra.mxu0 %v37_v2  ;;  %389 = vmatpush3.msra.mxu1 %v155_v6  ;;  %v152_v9 = vld [vmem:[%s540_s4] sm:$0xff]  ;;  %v269_v38 = vld [vmem:[%s543_s7 + $0x8] sm:$0xff] }
   0x5   :  { %381 = vmatprep.subr.mxu0 %v412_v0  ;;  %390 = vmatprep.subr.mxu1 %v412_v0  ;;  %v357_v32 = vld [vmem:[%s541_s2] ss:$0 sm:$0xff] }
   0x6   :  { %382 = vmatpush3.msra.mxu0 %v36_v3  ;;  %391 = vmatpush3.msra.mxu1 %v154_v7  ;;  %v358_v34 = vld [vmem:[%s542_s3] ss:$0 sm:$0xff] }
   0x7   :  { %383 = vmatprep.subr.mxu0 %v412_v0  ;;  %392 = vmatprep.subr.mxu1 %v412_v0  ;;  %v268_v39 = vld [vmem:[%s543_s7] sm:$0xff] }
   0x8   :  { %384 = vmatpush3.msra.mxu0 %v35_v4  ;;  %393 = vmatpush3.msra.mxu1 %v153_v8  ;;  %v360_v63 = vld [vmem:[%s545_s5] ss:$0 sm:$0xff] }
   0x9   :  { %386 = vmatmul.mubr.msk.f32.vlgmr.msra.gmra.mxu0 %vm39_vm1, %v34_v5  ;;  %399 = vmatprep.subr.mxu0 %v412_v0  ;;  %v361_v1 = vld [vmem:[%s546_s6] ss:$0 sm:$0xff] }
   0xa   :  { %403 = vmatprep.mubr.msk.f32.mxu0 %vm413_vm0, %v412_v0  ;;  %394 = vmatprep.subr.mxu1 %v412_v0  ;;  %v362_v5 = vld [vmem:[#allocation2] ss:$0 sm:$0xff] }
   0xb   :  { %395 = vmatpush3.msra.mxu1 %v152_v9  ;;  %400 = vmatpush3.msra.mxu0 %v269_v38 }
   0xc   :  { %401 = vmatprep.subr.mxu0 %v412_v0 }
   0xd   :  { %402 = vmatpush3.msra.mxu0 %v268_v39 }
  0xc9   :  { %v109_v10 = vpop.f32.mrf.mxu0 }
  0xca   :  { %v113_v11 = vsel %vm39_vm1, %v109_v10, 0.0 }
  0xcb   :  { %v114_v12 = vrot.slane %v113_v11, 4  ;;  %v387_v13 = vpop.f32.mrf.mxu0 }
  0xcd   :  { %v115_v14 = vadd.f32 %v114_v12, %v113_v11 }
  0xcf   :  { %v116_v15 = vrot.slane %v115_v14, 2 }
  0xd1   :  { %v117_v16 = vadd.f32 %v116_v15, %v115_v14 }
  0xd3   :  { %v118_v17 = vrot.slane %v117_v16, 1 }
  0xd5   :  { %v119_v18 = vadd.f32 %v118_v17, %v117_v16 }
  0xd7   :  { %v121_v19 = vmul.f32 0.125, %v119_v18 }
  0xd9   :  { %v122_v20 = vsub.f32 %v109_v10, %v121_v19 }
  0xdb   :  { %v123_v21 = vmul.f32 %v122_v20, %v122_v20 }
  0xdd   :  { %v124_v22 = vsel %vm39_vm1, %v123_v21, 0.0 }
  0xde   :  { %v125_v23 = vrot.slane %v124_v22, 4 }
  0xe0   :  { %v126_v24 = vadd.f32 %v125_v23, %v124_v22 }
  0xe2   :  { %v127_v25 = vrot.slane %v126_v24, 2 }
  0xe4   :  { %v128_v26 = vadd.f32 %v127_v25, %v126_v24 }
  0xe6   :  { %v129_v27 = vrot.slane %v128_v26, 1 }
  0xe8   :  { %v130_v28 = vadd.f32 %v129_v27, %v128_v26 }
  0xea   :  { %v131_v29 = vmul.f32 0.125, %v130_v28 }
  0xec   :  { %v132_v30 = vadd.f32 1e-05, %v131_v29 }
  0xee   :  { %408 = vrsqrt.f32 %v132_v30 }
  0xfb   :  { %v409_v31 = vpop.eup %408 }
  0xfc   :  { %v134_v33 = vmul.f32 %v409_v31, %v122_v20 }
  0xfe   :  { %v142_v35 = vmul.f32 %v357_v32, %v134_v33 }
 0x100   :  { %v150_v36 = vadd.f32 %v358_v34, %v142_v35 }
 0x102   :  { %v151_v37 = vmax.f32 %v150_v36, 0.0 }
 0x104   :  { %397 = vmatmul.mubr.msk.f32.vlgmr.msra.gmra.mxu1 %vm39_vm1, %v151_v37 }
 0x1c4   :  { %v225_v41 = vpop.f32.mrf.mxu1 }
 0x1c5   :  { %v230_v42 = vsel %vm229_vm2, %v225_v41, 0.0 }
 0x1c6   :  { %v231_v43 = vrot.slane %v230_v42, 4  ;;  %v398_v44 = vpop.f32.mrf.mxu1 }
 0x1c8   :  { %v232_v45 = vadd.f32 %v231_v43, %v230_v42 }
 0x1ca   :  { %v233_v46 = vrot.slane %v232_v45, 2 }
 0x1cc   :  { %v234_v47 = vadd.f32 %v233_v46, %v232_v45 }
 0x1ce   :  { %v235_v48 = vrot.slane %v234_v47, 1 }
 0x1d0   :  { %v236_v49 = vadd.f32 %v235_v48, %v234_v47 }
 0x1d2   :  { %v237_v50 = vmul.f32 0.125, %v236_v49 }
 0x1d4   :  { %v238_v51 = vsub.f32 %v225_v41, %v237_v50 }
 0x1d6   :  { %v239_v52 = vmul.f32 %v238_v51, %v238_v51 }
 0x1d8   :  { %v240_v53 = vsel %vm229_vm2, %v239_v52, 0.0 }
 0x1d9   :  { %v241_v54 = vrot.slane %v240_v53, 4 }
 0x1db   :  { %v242_v55 = vadd.f32 %v241_v54, %v240_v53 }
 0x1dd   :  { %v243_v56 = vrot.slane %v242_v55, 2 }
 0x1df   :  { %v244_v57 = vadd.f32 %v243_v56, %v242_v55 }
 0x1e1   :  { %v245_v58 = vrot.slane %v244_v57, 1 }
 0x1e3   :  { %v246_v59 = vadd.f32 %v245_v58, %v244_v57 }
 0x1e5   :  { %v247_v60 = vmul.f32 0.125, %v246_v59 }
 0x1e7   :  { %v248_v61 = vadd.f32 1e-05, %v247_v60 }
 0x1e9   :  { %410 = vrsqrt.f32 %v248_v61 }
 0x1f6   :  { %v411_v62 = vpop.eup %410 }
 0x1f7   :  { %v250_v0 = vmul.f32 %v411_v62, %v238_v51 }
 0x1f9   :  { %v258_v2 = vmul.f32 %v360_v63, %v250_v0 }
 0x1fb   :  { %v266_v3 = vadd.f32 %v361_v1, %v258_v2 }
 0x1fd   :  { %v267_v4 = vmax.f32 %v266_v3, 0.0 }
 0x1ff   :  { %404 = vmatmul.mubr.msk.f32.vlgmr.msra.gmra.mxu0 %vm229_vm2, %v267_v4 }
 0x2bf   :  { %v346_v6 = vpop.f32.mrf.mxu0 }
 0x2c0   :  { %v347_v7 = vadd.f32 %v362_v5, %v346_v6 }
 0x2c1   :  { %v405_v8 = vpop.f32.mrf.mxu0 }
 0x2c2   :  { %351 = vst.msk [vmem:[%s547_s9] sm:$0xff] %vm350_vm3, %v347_v7 }

</bundles_post_ra>
